<compile_context>
chip_gen: v7x
topology: tpu7x:2x2x1
jax: 0.10.0
libtpu: 0.0.40
codegen_flags: <defaults>
</compile_context>

<pallas_src>
import functools

import jax
import jax.numpy as jnp
from jax.experimental import pallas as pl
from jax.experimental.pallas import tpu as pltpu


def _qwen_mlp_kernel(x_ref, w1_ref, b1_ref, w2_ref, b2_ref, wc_ref, bc_ref,
                     o_ref, acc_ref):
    """One (token-tile, F-tile) step of: out = (x@w1+b1) * silu(x@w2+b2) @ wc + bc."""
    f = pl.program_id(1)

    x = x_ref[...]

    # Gate / up projections for this F tile (two MXU pushes, f32 accumulate).
    a1 = jnp.dot(x, w1_ref[...], preferred_element_type=jnp.float32) + b1_ref[...]
    a2 = jnp.dot(x, w2_ref[...], preferred_element_type=jnp.float32) + b2_ref[...]

    # intermediate = a1 * silu(a2); gating stays f32 (VPU/EUP filler under MXU).
    inter = a1 * (a2 * jax.nn.sigmoid(a2))

    # Partial c_proj contribution of this F tile.
    partial = jnp.dot(inter.astype(wc_ref.dtype), wc_ref[...],
                      preferred_element_type=jnp.float32)

    @pl.when(f == 0)
    def _first():
        # Write directly: saves a (bm, H) zero-fill + RMW pass on the acc.
        acc_ref[...] = partial

    @pl.when(f > 0)
    def _accumulate():
        acc_ref[...] += partial

    @pl.when(f == pl.num_programs(1) - 1)
    def _finalize():
        # c_proj bias added exactly once, at finalize.
        o_ref[...] = (acc_ref[...] + bc_ref[...].astype(jnp.float32)).astype(o_ref.dtype)


def _choose_block_f(F, block_f=None):
    """Pick the FFN tile bf and (possibly zero-padded) F it must divide."""
    if block_f is not None and F % block_f == 0 and (block_f % 128 == 0 or block_f == F):
        return block_f, F
    if F <= 512:
        return F, F                       # single F tile, no padding needed
    for bf in (512, 256):
        if F % bf == 0:
            return bf, F
    # Awkward F (e.g. 13696): zero-pad up to a clean 512 tile. Zero columns of
    # w1/w2 (and zero bias) give inter == 0, and zero rows of wc contribute 0,
    # so the padding is mathematically inert.
    Fp = pl.cdiv(F, 512) * 512
    return 512, Fp


def prepare_qwen_mlp_weights(w1, b1, w2, b2, wc, bc, *, block_f=None):
    """Load-time weight prep (hoist this out of the per-call hot path)."""
    H, F = w1.shape
    bf, Fp = _choose_block_f(F, block_f)
    if Fp != F:
        pad = Fp - F
        w1 = jnp.pad(w1, ((0, 0), (0, pad)))
        w2 = jnp.pad(w2, ((0, 0), (0, pad)))
        b1 = jnp.pad(b1, ((0, pad),))
        b2 = jnp.pad(b2, ((0, pad),))
        wc = jnp.pad(wc, ((0, pad), (0, 0)))
    params = (w1, b1.reshape(1, Fp), w2, b2.reshape(1, Fp), wc, bc.reshape(1, H))
    return params, bf


def _device_defaults():
    """Per-generation (block_m, vmem_limit_bytes) defaults."""
    try:
        kind = jax.devices()[0].device_kind.lower()
    except Exception:  # pragma: no cover - defensive
        kind = ""
    if "v5 lite" in kind or "v5e" in kind or "v5litepod" in kind:
        return 384, 96 * (1 << 20)     # roofline crossover ~240 FLOPs/byte
    if "v6" in kind:
        return 1024, 100 * (1 << 20)   # needs ~650 FLOPs/byte; 128 MiB VMEM
    if "v7" in kind:
        return 512, 56 * (1 << 20)     # compute-bound by bm~512; only 64 MiB VMEM
    return 512, 64 * (1 << 20)


def _vmem_bytes(bm, bf, H, act_itemsize, w_itemsize):
    """Rough VMEM footprint: double-buffered tiles + f32 accumulator."""
    x_and_out = 2 * bm * H * act_itemsize * 2
    weights = (2 * H * bf + bf * H) * w_itemsize * 2
    acc = bm * H * 4
    return x_and_out + weights + acc


@functools.partial(jax.jit,
                   static_argnames=("block_m", "block_f", "vmem_limit_bytes"))
def qwen_mlp_prepared(hidden_states, w1, b1, w2, b2, wc, bc, *,
                      block_m, block_f, vmem_limit_bytes):
    """hidden_states: [B, S, H] -> [B, S, H]. Weights already prepared
    (F padded so block_f divides it, biases reshaped to 2-D)."""
    B, S, H = hidden_states.shape
    Fp = w1.shape[1]
    bf = block_f
    nf = Fp // bf
    M = B * S

    act_sz = jnp.dtype(hidden_states.dtype).itemsize
    w_sz = jnp.dtype(w1.dtype).itemsize

    # Token tile: multiple of 16 rows for bf16 packing (32 for 8-bit, 8 for f32),
    # clamped to the problem size and to the VMEM budget.
    row_align = {1: 32, 2: 16}.get(act_sz, 8)
    bm = min(block_m, pl.cdiv(M, row_align) * row_align)
    bm = max(row_align, (bm // row_align) * row_align)
    while bm > 128 and _vmem_bytes(bm, bf, H, act_sz, w_sz) > 0.9 * vmem_limit_bytes:
        bm -= 128

    Mp = pl.cdiv(M, bm) * bm
    x = hidden_states.reshape(M, H)
    if Mp != M:
        # TODO(synk): mask the tail token tile in-kernel instead of padding x.
        x = jnp.pad(x, ((0, Mp - M), (0, 0)))

    out = pl.pallas_call(
        _qwen_mlp_kernel,
        out_shape=jax.ShapeDtypeStruct((Mp, H), hidden_states.dtype),
        grid_spec=pltpu.PrefetchScalarGridSpec(
            num_scalar_prefetch=0,
            grid=(Mp // bm, nf),                                 # (tokens, F-reduction)
            in_specs=[
                pl.BlockSpec((bm, H), lambda i, f: (i, 0)),      # x tile
                pl.BlockSpec((H, bf), lambda i, f: (0, f)),      # w1 tile
                pl.BlockSpec((1, bf), lambda i, f: (0, f)),      # b1 tile
                pl.BlockSpec((H, bf), lambda i, f: (0, f)),      # w2 tile
                pl.BlockSpec((1, bf), lambda i, f: (0, f)),      # b2 tile
                pl.BlockSpec((bf, H), lambda i, f: (f, 0)),      # c_proj weight tile
                pl.BlockSpec((1, H), lambda i, f: (0, 0)),       # c_proj bias
            ],
            out_specs=pl.BlockSpec((bm, H), lambda i, f: (i, 0)),
            scratch_shapes=[pltpu.VMEM((bm, H), jnp.float32)],   # f32 accumulator
        ),
        compiler_params=pltpu.CompilerParams(
            dimension_semantics=("parallel", "arbitrary"),
            vmem_limit_bytes=vmem_limit_bytes,
        ),
    )(x, w1, b1, w2, b2, wc, bc)

    if Mp != M:
        out = out[:M]
    return out.reshape(B, S, H)


def qwen_mlp(hidden_states, w1, b1, w2, b2, wc, bc, *,
             block_m=None, block_f=None, vmem_limit_bytes=None):
    """Convenience entry point. For production, call prepare_qwen_mlp_weights()
    once at load time and feed its output to qwen_mlp_prepared()."""
    # TODO(synk): tp_group/tp_size all-reduce of RowLinear not modeled (single shard).
    # TODO(synk): v7x decode could split the F reduction across the 2 TensorCores.
    params, bf = prepare_qwen_mlp_weights(w1, b1, w2, b2, wc, bc, block_f=block_f)
    dflt_bm, dflt_vmem = _device_defaults()
    return qwen_mlp_prepared(
        hidden_states, *params,
        block_m=block_m if block_m is not None else dflt_bm,
        block_f=bf,
        vmem_limit_bytes=vmem_limit_bytes if vmem_limit_bytes is not None else dflt_vmem)


def _reference(hidden_states, w1, b1, w2, b2, wc, bc):
    a1 = jnp.einsum("bsh,hf->bsf", hidden_states, w1) + b1
    a2 = jnp.einsum("bsh,hf->bsf", hidden_states, w2) + b2
    inter = a1 * (a2 * jax.nn.sigmoid(a2))
    return jnp.einsum("bsf,fh->bsh", inter, wc) + bc


def _make_inputs(key, batch, seq, hidden_size, ffn_hidden_size, dtype):
    kx, k1, kb1, k2, kb2, kc, kbc = jax.random.split(key, 7)
    hs = jax.random.normal(kx, (batch, seq, hidden_size), dtype)
    s_in = 1.0 / (hidden_size ** 0.5)
    s_ffn = 1.0 / (ffn_hidden_size ** 0.5)
    w1 = jax.random.normal(k1, (hidden_size, ffn_hidden_size), dtype) * s_in
    b1 = jax.random.normal(kb1, (ffn_hidden_size,), dtype) * 0.01
    w2 = jax.random.normal(k2, (hidden_size, ffn_hidden_size), dtype) * s_in
    b2 = jax.random.normal(kb2, (ffn_hidden_size,), dtype) * 0.01
    wc = jax.random.normal(kc, (ffn_hidden_size, hidden_size), dtype) * s_ffn
    bc = jax.random.normal(kbc, (hidden_size,), dtype) * 0.01
    return hs, w1, b1, w2, b2, wc, bc


if __name__ == "__main__":
    key = jax.random.PRNGKey(0)
    k_a, k_b, k_c = jax.random.split(key, 3)

    # Case 1: small module-consistent shapes; weight prep hoisted out of the call.
    hs, w1, b1, w2, b2, wc, bc = _make_inputs(k_a, 2, 8, 32, 64, jnp.float32)
    params, bf = prepare_qwen_mlp_weights(w1, b1, w2, b2, wc, bc)
    out = jax.block_until_ready(
        qwen_mlp_prepared(hs, *params, block_m=256, block_f=bf,
                          vmem_limit_bytes=64 * (1 << 20)))
    ref = _reference(hs, w1, b1, w2, b2, wc, bc)
    assert out.shape == (2, 8, 32)
    assert jnp.allclose(out, ref, atol=1e-3, rtol=1e-3)

    # Case 2: exercises the F-reduction grid axis (nf=2) and token padding (M=10).
    args2 = _make_inputs(k_b, 2, 5, 32, 256, jnp.float32)
    out2 = jax.block_until_ready(qwen_mlp(*args2, block_f=128))
    ref2 = _reference(*args2)
    assert out2.shape == (2, 5, 32)
    assert jnp.allclose(out2, ref2, atol=1e-3, rtol=1e-3)

    # Case 3: awkward F (576) exercising zero-padding of F to a clean 512 tile.
    args3 = _make_inputs(k_c, 1, 4, 32, 576, jnp.float32)
    out3 = jax.block_until_ready(qwen_mlp(*args3))
    ref3 = _reference(*args3)
    assert out3.shape == (1, 4, 32)
    assert jnp.allclose(out3, ref3, atol=1e-3, rtol=1e-3)

    print("KERNEL_OK")
</pallas_src>

<mosaic_0001>
module attributes {stable_mosaic.version = 11 : i64} {
  func.func @_qwen_mlp_kernel(%arg0: i32, %arg1: i32, %arg2: memref<16x32xf32, #tpu.memory_space<vmem>>, %arg3: memref<32x64xf32, #tpu.memory_space<vmem>>, %arg4: memref<1x64xf32, #tpu.memory_space<vmem>>, %arg5: memref<32x64xf32, #tpu.memory_space<vmem>>, %arg6: memref<1x64xf32, #tpu.memory_space<vmem>>, %arg7: memref<64x32xf32, #tpu.memory_space<vmem>>, %arg8: memref<1x32xf32, #tpu.memory_space<vmem>>, %arg9: memref<16x32xf32, #tpu.memory_space<vmem>>, %arg10: memref<16x32xf32, #tpu.memory_space<vmem>>) attributes {dimension_semantics = [#tpu.dimension_semantics<parallel>, #tpu.dimension_semantics<arbitrary>], iteration_bounds = array<i64: 1, 1>, scalar_prefetch = 0 : i64, scratch_operands = 1 : i64, tpu.core_type = #tpu.core_type<tc>, window_params = [{transform_indices = @transform_0, window_bounds = array<i64: 16, 32>}, {transform_indices = @transform_1, window_bounds = array<i64: 32, 64>}, {transform_indices = @transform_2, window_bounds = array<i64: 1, 64>}, {transform_indices = @transform_3, window_bounds = array<i64: 32, 64>}, {transform_indices = @transform_4, window_bounds = array<i64: 1, 64>}, {transform_indices = @transform_5, window_bounds = array<i64: 64, 32>}, {pipeline_mode = #tpu.pipeline_mode<synchronous>, transform_indices = @transform_6, window_bounds = array<i64: 1, 32>}, {transform_indices = @transform_7, window_bounds = array<i64: 16, 32>}]} {
    %c0 = arith.constant 0 : index
    %c0_0 = arith.constant 0 : index
    %0 = vector.load %arg2[%c0, %c0_0] : memref<16x32xf32, #tpu.memory_space<vmem>>, vector<16x32xf32>
    %c0_1 = arith.constant 0 : index
    %c0_2 = arith.constant 0 : index
    %1 = vector.load %arg3[%c0_1, %c0_2] : memref<32x64xf32, #tpu.memory_space<vmem>>, vector<32x64xf32>
    %cst = arith.constant dense<0.000000e+00> : vector<16x64xf32>
    %2 = tpu.matmul %0, %1, %cst {dimension_numbers = #tpu.dot_dimension_numbers<[1], [0], [0], [1], [0, 0, 1, 1], [], []>} : vector<16x32xf32>, vector<32x64xf32>, vector<16x64xf32> -> vector<16x64xf32>
    %c0_3 = arith.constant 0 : index
    %c0_4 = arith.constant 0 : index
    %3 = vector.load %arg4[%c0_3, %c0_4] : memref<1x64xf32, #tpu.memory_space<vmem>>, vector<1x64xf32>
    %4 = vector.broadcast %3 : vector<1x64xf32> to vector<16x64xf32>
    %5 = arith.addf %2, %4 : vector<16x64xf32>
    %c0_5 = arith.constant 0 : index
    %c0_6 = arith.constant 0 : index
    %6 = vector.load %arg5[%c0_5, %c0_6] : memref<32x64xf32, #tpu.memory_space<vmem>>, vector<32x64xf32>
    %cst_7 = arith.constant dense<0.000000e+00> : vector<16x64xf32>
    %7 = tpu.matmul %0, %6, %cst_7 {dimension_numbers = #tpu.dot_dimension_numbers<[1], [0], [0], [1], [0, 0, 1, 1], [], []>} : vector<16x32xf32>, vector<32x64xf32>, vector<16x64xf32> -> vector<16x64xf32>
    %c0_8 = arith.constant 0 : index
    %c0_9 = arith.constant 0 : index
    %8 = vector.load %arg6[%c0_8, %c0_9] : memref<1x64xf32, #tpu.memory_space<vmem>>, vector<1x64xf32>
    %9 = vector.broadcast %8 : vector<1x64xf32> to vector<16x64xf32>
    %10 = arith.addf %7, %9 : vector<16x64xf32>
    %11 = arith.negf %10 : vector<16x64xf32>
    %12 = math.exp %11 : vector<16x64xf32>
    %cst_10 = arith.constant 1.000000e+00 : f32
    %13 = vector.broadcast %cst_10 : f32 to vector<16x64xf32>
    %14 = arith.addf %13, %12 : vector<16x64xf32>
    %15 = arith.divf %13, %14 : vector<16x64xf32>
    %16 = arith.mulf %10, %15 : vector<16x64xf32>
    %17 = arith.mulf %5, %16 : vector<16x64xf32>
    %c0_11 = arith.constant 0 : index
    %c0_12 = arith.constant 0 : index
    %18 = vector.load %arg7[%c0_11, %c0_12] : memref<64x32xf32, #tpu.memory_space<vmem>>, vector<64x32xf32>
    %cst_13 = arith.constant dense<0.000000e+00> : vector<16x32xf32>
    %19 = tpu.matmul %17, %18, %cst_13 {dimension_numbers = #tpu.dot_dimension_numbers<[1], [0], [0], [1], [0, 0, 1, 1], [], []>} : vector<16x64xf32>, vector<64x32xf32>, vector<16x32xf32> -> vector<16x32xf32>
    %c0_i32 = arith.constant 0 : i32
    %20 = arith.cmpi eq, %arg1, %c0_i32 : i32
    %21 = arith.extui %20 : i1 to i32
    %c0_i32_14 = arith.constant 0 : i32
    %22 = arith.cmpi ne, %21, %c0_i32_14 : i32
    scf.if %22 {
      %c0_19 = arith.constant 0 : index
      %c0_20 = arith.constant 0 : index
      %29 = vector.load %arg10[%c0_19, %c0_20] : memref<16x32xf32, #tpu.memory_space<vmem>>, vector<16x32xf32>
      tpu.vector_store %arg10[%c0_19, %c0_20], %19 {strides = array<i32>} : memref<16x32xf32, #tpu.memory_space<vmem>>, vector<16x32xf32>,
    } else {
    }
    %c0_i32_15 = arith.constant 0 : i32
    %23 = arith.cmpi sgt, %arg1, %c0_i32_15 : i32
    %24 = arith.extui %23 : i1 to i32
    %c0_i32_16 = arith.constant 0 : i32
    %25 = arith.cmpi ne, %24, %c0_i32_16 : i32
    scf.if %25 {
      %c0_19 = arith.constant 0 : index
      %c0_20 = arith.constant 0 : index
      %29 = vector.load %arg10[%c0_19, %c0_20] : memref<16x32xf32, #tpu.memory_space<vmem>>, vector<16x32xf32>
      %30 = arith.addf %29, %19 : vector<16x32xf32>
      %c0_21 = arith.constant 0 : index
      %c0_22 = arith.constant 0 : index
      %31 = vector.load %arg10[%c0_21, %c0_22] : memref<16x32xf32, #tpu.memory_space<vmem>>, vector<16x32xf32>
      tpu.vector_store %arg10[%c0_21, %c0_22], %30 {strides = array<i32>} : memref<16x32xf32, #tpu.memory_space<vmem>>, vector<16x32xf32>,
    } else {
    }
    %c0_i32_17 = arith.constant 0 : i32
    %26 = arith.cmpi eq, %arg1, %c0_i32_17 : i32
    %27 = arith.extui %26 : i1 to i32
    %c0_i32_18 = arith.constant 0 : i32
    %28 = arith.cmpi ne, %27, %c0_i32_18 : i32
    scf.if %28 {
      %c0_19 = arith.constant 0 : index
      %c0_20 = arith.constant 0 : index
      %29 = vector.load %arg10[%c0_19, %c0_20] : memref<16x32xf32, #tpu.memory_space<vmem>>, vector<16x32xf32>
      %c0_21 = arith.constant 0 : index
      %c0_22 = arith.constant 0 : index
      %30 = vector.load %arg8[%c0_21, %c0_22] : memref<1x32xf32, #tpu.memory_space<vmem>>, vector<1x32xf32>
      %31 = vector.broadcast %30 : vector<1x32xf32> to vector<16x32xf32>
      %32 = arith.addf %29, %31 : vector<16x32xf32>
      %c0_23 = arith.constant 0 : index
      %c0_24 = arith.constant 0 : index
      %33 = vector.load %arg9[%c0_23, %c0_24] : memref<16x32xf32, #tpu.memory_space<vmem>>, vector<16x32xf32>
      tpu.vector_store %arg9[%c0_23, %c0_24], %32 {strides = array<i32>} : memref<16x32xf32, #tpu.memory_space<vmem>>, vector<16x32xf32>,
    } else {
    }
    return
  }
  func.func @transform_0(%arg0: i32, %arg1: i32) -> (i32, i32) {
    %c0_i32 = arith.constant 0 : i32
    %c0_i32_0 = arith.constant 0 : i32
    return %arg0, %c0_i32 : i32, i32
  }
  func.func @transform_1(%arg0: i32, %arg1: i32) -> (i32, i32) {
    %c0_i32 = arith.constant 0 : i32
    %c0_i32_0 = arith.constant 0 : i32
    return %c0_i32, %arg1 : i32, i32
  }
  func.func @transform_2(%arg0: i32, %arg1: i32) -> (i32, i32) {
    %c0_i32 = arith.constant 0 : i32
    %c0_i32_0 = arith.constant 0 : i32
    return %c0_i32, %arg1 : i32, i32
  }
  func.func @transform_3(%arg0: i32, %arg1: i32) -> (i32, i32) {
    %c0_i32 = arith.constant 0 : i32
    %c0_i32_0 = arith.constant 0 : i32
    return %c0_i32, %arg1 : i32, i32
  }
  func.func @transform_4(%arg0: i32, %arg1: i32) -> (i32, i32) {
    %c0_i32 = arith.constant 0 : i32
    %c0_i32_0 = arith.constant 0 : i32
    return %c0_i32, %arg1 : i32, i32
  }
  func.func @transform_5(%arg0: i32, %arg1: i32) -> (i32, i32) {
    %c0_i32 = arith.constant 0 : i32
    %c0_i32_0 = arith.constant 0 : i32
    return %arg1, %c0_i32 : i32, i32
  }
  func.func @transform_6(%arg0: i32, %arg1: i32) -> (i32, i32) {
    %c0_i32 = arith.constant 0 : i32
    %c0_i32_0 = arith.constant 0 : i32
    %c0_i32_1 = arith.constant 0 : i32
    return %c0_i32, %c0_i32_0 : i32, i32
  }
  func.func @transform_7(%arg0: i32, %arg1: i32) -> (i32, i32) {
    %c0_i32 = arith.constant 0 : i32
    %c0_i32_0 = arith.constant 0 : i32
    return %arg0, %c0_i32 : i32, i32
  }
}

</mosaic_0001>

<bundles_post_ra>
// kernel: qwen_mlp_prepared.1
= control target key start
LH: loop header
LB: loop body
LE: loop exit
PB: predicated region body
PF: predicated region fallthrough
CT: control target
= control target key end

     0   :  { %12 = vsyncpa [#allocation4], 0  ;;  %s948_s0 = inlined_call_operand.hbm [shape: f32[16,32], index: 0, kind: input, shape index: {}]   ;;  %s949_s1 = inlined_call_operand.hbm [shape: f32[32,64], index: 1, kind: input, shape index: {}]   ;;  %s950_s2 = inlined_call_operand.hbm [shape: f32[1,64], index: 2, kind: input, shape index: {}]   ;;  %s951_s3 = inlined_call_operand.hbm [shape: f32[32,64], index: 3, kind: input, shape index: {}]   ;;  %s952_s4 = inlined_call_operand.hbm [shape: f32[1,64], index: 4, kind: input, shape index: {}]   ;;  %s953_s5 = inlined_call_operand.hbm [shape: f32[64,32], index: 5, kind: input, shape index: {}]   ;;  %s954_s6 = inlined_call_operand.hbm [shape: f32[1,32], index: 6, kind: input, shape index: {}]   ;;  %s955_s7 = inlined_call_operand.hbm [shape: f32[16,32], index: 7, kind: output, shape index: {}]  }
   0x1   :  { %13 = vsyncpa [#allocation7], 0 }
   0x2   :  { %14 = vsyncpa [#allocation10], 0 }
   0x3   :  { %15 = vsyncpa [#allocation13], 0 }
   0x4   :  { %16 = vsyncpa [#allocation5], 0  ;;  %s765_s24 = smov [#allocation6]   ;;  %s766_s26 = smov [#allocation9]  }
   0x5   :  { %s34_s25 = sshll.u32 %s765_s24, 4  ;;  %s56_s27 = sshll.u32 %s766_s26, 4  ;;  %s35_s25 = int_to_ptr.vmem [resolvable:$true] %s34_s25  ;;  %s815_s27 = int_to_ptr.vmem [resolvable:$true] %s56_s27 }
   0x6   :  { %s579_s30 = scalar_lea.hbm %s949_s1, 512 }
   0x7   :  { %p580_p0 = scmp.ne.s32.totalorder %s949_s1, %s579_s30  ;;  %p583_p1 = scmp.lt.u32.totalorder %s579_s30, %s949_s1 }
   0x9   :  { %p585_p2 = pnand %p583_p1, %p580_p0 }
   0xb   :  { %588 = shalt.err (!%p585_p2)
}
   0xc   :  { %s589_s12 = scalar_lea.vmem %s35_s25, 512  ;;  %p594_p4 = scmp.lt.s32.totalorder %s35_s25, %s35_s25 }
   0xd   :  { %p590_p3 = scmp.ne.s32.totalorder %s35_s25, %s589_s12  ;;  %p595_p5 = scmp.lt.s32.totalorder %s589_s12, %s589_s12 }
   0xf   :  { %p596_p6 = por %p595_p5, %p594_p4 }
  0x11   :  { %p597_p7 = pnand %p596_p6, %p590_p3 }
  0x13   :  { %600 = shalt.err (!%p597_p7)
}
  0x14   :  { %s767_s13 = smov 128   ;;  %s768_s14 = smov 8  }
  0x15   :  { %40 = dma.hbm_to_vmem [thread:$0]  %s949_s1, 512, %s35_s25, [#allocation7], %s767_s13, %s767_s13, %s768_s14  }
  0x16   :  { %s601_s19 = scalar_lea.hbm %s951_s3, 512 }
  0x17   :  { %p602_p8 = scmp.ne.s32.totalorder %s951_s3, %s601_s19  ;;  %p605_p9 = scmp.lt.u32.totalorder %s601_s19, %s951_s3 }
  0x19   :  { %p607_p10 = pnand %p605_p9, %p602_p8 }
  0x1b   :  { %610 = shalt.err (!%p607_p10)
}
  0x1c   :  { %s611_s24 = scalar_lea.vmem %s815_s27, 512  ;;  %p616_p12 = scmp.lt.s32.totalorder %s815_s27, %s815_s27 }
  0x1d   :  { %p612_p11 = scmp.ne.s32.totalorder %s815_s27, %s611_s24  ;;  %p617_p13 = scmp.lt.s32.totalorder %s611_s24, %s611_s24 }
  0x1f   :  { %p618_p0 = por %p617_p13, %p616_p12 }
  0x21   :  { %p619_p1 = pnand %p618_p0, %p612_p11 }
  0x23   :  { %622 = shalt.err (!%p619_p1)
}
  0x24   :  { %62 = dma.hbm_to_vmem [thread:$0]  %s951_s3, 512, %s815_s27, [#allocation10], %s767_s13, %s767_s13, %s768_s14  }
  0x25   :  { %s769_s26 = smov [#allocation12]   ;;  %s770_s29 = smov [#allocation3]  }
  0x26   :  { %s78_s28 = sshll.u32 %s769_s26, 4  ;;  %s22_s30 = sshll.u32 %s770_s29, 4  ;;  %s79_s28 = int_to_ptr.vmem [resolvable:$true] %s78_s28  ;;  %s852_s30 = int_to_ptr.vmem [resolvable:$true] %s22_s30 }
  0x27   :  { %s623_s10 = scalar_lea.hbm %s953_s5, 1024 }
  0x28   :  { %p624_p2 = scmp.ne.s32.totalorder %s953_s5, %s623_s10  ;;  %p627_p3 = scmp.lt.u32.totalorder %s623_s10, %s953_s5 }
  0x2a   :  { %p629_p4 = pnand %p627_p3, %p624_p2 }
  0x2c   :  { %632 = shalt.err (!%p629_p4)
}
  0x2d   :  { %s633_s3 = scalar_lea.vmem %s79_s28, 1024  ;;  %p638_p6 = scmp.lt.s32.totalorder %s79_s28, %s79_s28 }
  0x2e   :  { %p634_p5 = scmp.ne.s32.totalorder %s79_s28, %s633_s3  ;;  %p639_p7 = scmp.lt.s32.totalorder %s633_s3, %s633_s3 }
  0x30   :  { %p640_p8 = por %p639_p7, %p638_p6 }
  0x32   :  { %p641_p9 = pnand %p640_p8, %p634_p5 }
  0x34   :  { %644 = shalt.err (!%p641_p9)
}
  0x35   :  { %84 = dma.hbm_to_vmem [thread:$0]  %s953_s5, 1024, %s79_s28, [#allocation13], %s767_s13, %s767_s13, %s768_s14  }
  0x36   :  { %s645_s20 = scalar_lea.hbm %s948_s0, 256 }
  0x37   :  { %p646_p10 = scmp.ne.s32.totalorder %s948_s0, %s645_s20  ;;  %p649_p11 = scmp.lt.u32.totalorder %s645_s20, %s948_s0 }
  0x39   :  { %p651_p12 = pnand %p649_p11, %p646_p10 }
  0x3b   :  { %654 = shalt.err (!%p651_p12)
}
  0x3c   :  { %s655_s1 = scalar_lea.vmem %s852_s30, 256  ;;  %p660_p0 = scmp.lt.s32.totalorder %s852_s30, %s852_s30 }
  0x3d   :  { %p656_p13 = scmp.ne.s32.totalorder %s852_s30, %s655_s1  ;;  %p661_p1 = scmp.lt.s32.totalorder %s655_s1, %s655_s1 }
  0x3f   :  { %p662_p2 = por %p661_p1, %p660_p0 }
  0x41   :  { %p663_p3 = pnand %p662_p2, %p656_p13 }
  0x43   :  { %666 = shalt.err (!%p663_p3)
}
  0x44   :  { %28 = dma.hbm_to_vmem [thread:$0]  %s948_s0, 256, %s852_s30, [#allocation4], %s767_s13, %s767_s13, %s768_s14  }
  0x45   :  { %s771_s26 = smov [#allocation8]   ;;  %s772_s29 = smov [#allocation11]  }
  0x46   :  { %s47_s28 = sshll.u32 %s771_s26, 4  ;;  %s69_s8 = sshll.u32 %s772_s29, 4  ;;  %s48_s28 = int_to_ptr.vmem [resolvable:$true] %s47_s28  ;;  %s70_s8 = int_to_ptr.vmem [resolvable:$true] %s69_s8 }
  0x47   :  { %s667_s11 = scalar_lea.hbm %s950_s2, 16 }
  0x48   :  { %p668_p4 = scmp.ne.s32.totalorder %s950_s2, %s667_s11  ;;  %p671_p5 = scmp.lt.u32.totalorder %s667_s11, %s950_s2 }
  0x4a   :  { %p673_p6 = pnand %p671_p5, %p668_p4 }
  0x4c   :  { %676 = shalt.err (!%p673_p6)
}
  0x4d   :  { %s677_s0 = scalar_lea.vmem %s48_s28, 16  ;;  %s681_s30 = scalar_lea.vmem %s48_s28, 32 }
  0x4e   :  { %p678_p7 = scmp.ne.s32.totalorder %s48_s28, %s677_s0  ;;  %p682_p8 = scmp.lt.s32.totalorder %s48_s28, %s48_s28 }
  0x4f   :  { %p683_p9 = scmp.lt.s32.totalorder %s681_s30, %s677_s0 }
  0x51   :  { %p684_p10 = por %p683_p9, %p682_p8 }
  0x53   :  { %p685_p11 = pnand %p684_p10, %p678_p7 }
  0x55   :  { %688 = shalt.err (!%p685_p11)
}
  0x56   :  { %50 = dma.hbm_to_vmem [thread:$0]  %s950_s2, 16, %s48_s28, [#allocation7]  }
  0x57   :  { %s689_s20 = scalar_lea.hbm %s952_s4, 16 }
  0x58   :  { %p690_p12 = scmp.ne.s32.totalorder %s952_s4, %s689_s20  ;;  %p693_p13 = scmp.lt.u32.totalorder %s689_s20, %s952_s4 }
  0x5a   :  { %p695_p0 = pnand %p693_p13, %p690_p12 }
  0x5c   :  { %698 = shalt.err (!%p695_p0)
}
  0x5d   :  { %s699_s1 = scalar_lea.vmem %s70_s8, 16  ;;  %s703_s5 = scalar_lea.vmem %s70_s8, 32 }
  0x5e   :  { %p700_p1 = scmp.ne.s32.totalorder %s70_s8, %s699_s1  ;;  %p704_p2 = scmp.lt.s32.totalorder %s70_s8, %s70_s8 }
  0x5f   :  { %p705_p3 = scmp.lt.s32.totalorder %s703_s5, %s699_s1 }
  0x61   :  { %p706_p4 = por %p705_p3, %p704_p2 }
  0x63   :  { %p707_p5 = pnand %p706_p4, %p700_p1 }
  0x65   :  { %710 = shalt.err (!%p707_p5)
}
  0x66   :  { %72 = dma.hbm_to_vmem [thread:$0]  %s952_s4, 16, %s70_s8, [#allocation10]  }
  0x67   :  { %s773_s26 = smov [#allocation14]   ;;  %s711_s10 = scalar_lea.hbm %s954_s6, 16 }
  0x68   :  { %s91_s28 = sshll.u32 %s773_s26, 4  ;;  %p712_p6 = scmp.ne.s32.totalorder %s954_s6, %s711_s10  ;;  %s92_s28 = int_to_ptr.vmem [resolvable:$true] %s91_s28 }
  0x69   :  { %p715_p7 = scmp.lt.u32.totalorder %s711_s10, %s954_s6 }
  0x6b   :  { %p717_p8 = pnand %p715_p7, %p712_p6 }
  0x6d   :  { %720 = shalt.err (!%p717_p8)
}
  0x6e   :  { %s721_s3 = scalar_lea.vmem %s92_s28, 16  ;;  %s725_s4 = scalar_lea.vmem %s92_s28, 32 }
  0x6f   :  { %p722_p9 = scmp.ne.s32.totalorder %s92_s28, %s721_s3  ;;  %p726_p10 = scmp.lt.s32.totalorder %s92_s28, %s92_s28 }
  0x70   :  { %p727_p11 = scmp.lt.s32.totalorder %s725_s4, %s721_s3 }
  0x72   :  { %p728_p12 = por %p727_p11, %p726_p10 }
  0x74   :  { %p729_p13 = pnand %p728_p12, %p722_p9 }
  0x76   :  { %732 = shalt.err (!%p729_p13)
}
  0x77   :  { %94 = dma.hbm_to_vmem [thread:$0]  %s954_s6, 16, %s92_s28, [#allocation13]  }
  0x78   :  { %755 = dma.done.wait [#allocation4], 256  }
  0x79   :  { %756 = vsyncadd [#allocation4], 4294967040 }
  0x7a   :  { %757 = dma.done.wait [#allocation7], 528  }
  0x7b   :  { %758 = vsyncadd [#allocation7], 4294966768 }
  0x7c   :  { %759 = dma.done.wait [#allocation10], 528  }
  0x7d   :  { %760 = vsyncadd [#allocation10], 4294966768 }
  0x7e   :  { %761 = dma.done.wait [#allocation13], 1040  }
  0x7f   :  { %762 = vsyncadd [#allocation13], 4294966256  ;;  %vm129_vm0 = vcmask 261120   ;;  %v118_v0 = vld [vmem:[#allocation6] sm:$0xff]  ;;  %v119_v1 = vld [vmem:[#allocation6 + $0x8] sm:$0xff]  ;;  %vm321_vm1 = vcmask 523264  }
  0x80   :  { %v120_v2 = vld [vmem:[#allocation6 + $0x10] sm:$0xff]  ;;  %v529_v3 = vpack.c.bf16 %v119_v1, %v118_v0  ;;  %v121_v4 = vld [vmem:[#allocation6 + $0x18] sm:$0xff]  ;;  %v211_v7 = vld [vmem:[#allocation9] sm:$0xff]  ;;  %s774_s6 = smov [#allocation15]  }
  0x81   :  { %v116_v5 = vld [vmem:[#allocation3] sm:$0xff]  ;;  %v533_v6 = vpack.c.bf16 %v121_v4, %v120_v2  ;;  %v214_v11 = vld [vmem:[#allocation9 + $0x18] sm:$0xff]  ;;  %v313_v14 = vld [vmem:[#allocation12] sm:$0xff]  ;;  %s440_s30 = sshll.u32 %s774_s6, 4  ;;  %s441_s30 = int_to_ptr.vmem [resolvable:$true] %s440_s30 }
  0x82   :  { %496 = vmatprep.mubr.msk.f32.mxu1 %vm129_vm0, %v116_v5  ;;  %v212_v8 = vld [vmem:[#allocation9 + $0x8] sm:$0xff]  ;;  %530 = vmatprep.subr.bf16.mxu1 %v529_v3  ;;  %v213_v10 = vld [vmem:[#allocation9 + $0x10] sm:$0xff]  ;;  %v316_v18 = vld [vmem:[#allocation12 + $0x18] sm:$0xff]  ;;  %s733_s27 = scalar_lea.vmem %s441_s30, 256  ;;  %p738_p1 = scmp.lt.s32.totalorder %s441_s30, %s441_s30 }
  0x83   :  { %532 = vmatpush3.bf16.msra.mxu1 %v529_v3  ;;  %v537_v9 = vpack.c.bf16 %v212_v8, %v211_v7  ;;  %v117_v12 = vld [vmem:[#allocation3 + $0x8] sm:$0xff]  ;;  %v541_v13 = vpack.c.bf16 %v214_v11, %v213_v10  ;;  %v314_v15 = vld [vmem:[#allocation12 + $0x8] sm:$0xff]  ;;  %v317_v20 = vld [vmem:[#allocation12 + $0x20] sm:$0xff]  ;;  %p734_p0 = scmp.ne.s32.totalorder %s441_s30, %s733_s27  ;;  %p739_p2 = scmp.lt.s32.totalorder %s733_s27, %s733_s27 }
  0x84   :  { %534 = vmatprep.subr.bf16.mxu1 %v533_v6  ;;  %v545_v16 = vpack.c.bf16 %v314_v15, %v313_v14  ;;  %v315_v17 = vld [vmem:[#allocation12 + $0x10] sm:$0xff]  ;;  %v318_v21 = vld [vmem:[#allocation12 + $0x28] sm:$0xff]  ;;  %v320_v24 = vld [vmem:[#allocation12 + $0x38] sm:$0xff] }
  0x85   :  { %v549_v19 = vpack.c.bf16 %v316_v18, %v315_v17  ;;  %v553_v22 = vpack.c.bf16 %v318_v21, %v317_v20  ;;  %v319_v23 = vld [vmem:[#allocation12 + $0x30] sm:$0xff]  ;;  %v458_v28 = vld [vmem:[#allocation11] ss:$0 sm:$0xff]  ;;  %v455_v39 = vld [vmem:[#allocation8] ss:$0 sm:$0xff]  ;;  %p740_p3 = por %p739_p2, %p738_p1 }
  0x86   :  { %546 = vmatprep.subr.bf16.mxu0 %v545_v16  ;;  %v557_v25 = vpack.c.bf16 %v320_v24, %v319_v23  ;;  %v465_v50 = vld [vmem:[#allocation14] ss:$0 sm:$0xff] }
  0x87   :  { %536 = vmatpush3.bf16.msra.mxu1 %v533_v6  ;;  %548 = vmatpush3.bf16.msra.mxu0 %v545_v16  ;;  %p741_p4 = pnand %p740_p3, %p734_p0 }
  0x88   :  { %538 = vmatprep.subr.bf16.mxu1 %v537_v9  ;;  %550 = vmatprep.subr.bf16.mxu0 %v549_v19 }
  0x8a   :  { %497 = vmatmul.mubr.msk.f32.vlgmr.msra.gmra.mrb[0].mxu1 %vm129_vm0, %v117_v12 }
  0x8b   :  { %540 = vmatpush3.bf16.msra.mxu1 %v537_v9  ;;  %507 = vmatprep.mubr.msk.f32.mxu1 %vm129_vm0, %v116_v5 }
  0x8c   :  { %542 = vmatprep.subr.bf16.mxu1 %v541_v13  ;;  %552 = vmatpush3.bf16.msra.mxu0 %v549_v19 }
  0x8d   :  { %554 = vmatprep.subr.bf16.mxu0 %v553_v22 }
  0x8f   :  { %544 = vmatpush3.bf16.msra.mxu1 %v541_v13 }
  0x90   :  { %556 = vmatpush3.bf16.msra.mxu0 %v553_v22 }
  0x91   :  { %558 = vmatprep.subr.bf16.mxu0 %v557_v25 }
  0x92   :  { %508 = vmatmul.mubr.msk.f32.vlgmr.msra.gmra.mrb[2].mxu1 %vm129_vm0, %v117_v12 }
  0x94   :  { %560 = vmatpush3.bf16.msra.mxu0 %v557_v25 }
 0x15d   :  { %v498_v26 = vpop.f32.mrb[0].mxu1 }
 0x15e   :  { %v202_v27 = vpop.f32.mrb[1].mxu1  ;;  %v208_v42 = vadd.f32 %v498_v26, %v455_v39 }
 0x15f   :  { %v203_v44 = vadd.f32 %v455_v39, %v202_v27 }
 0x165   :  { %v509_v29 = vpop.f32.mrb[2].mxu1 }
 0x166   :  { %v294_v30 = vadd.f32 %v509_v29, %v458_v28  ;;  %v288_v31 = vpop.f32.mrb[3].mxu1 }
 0x167   :  { %v289_v32 = vadd.f32 %v458_v28, %v288_v31 }
 0x168   :  { %v462_v33 = vmul.f32 -1.442695, %v294_v30 }
 0x169   :  { %v461_v34 = vmul.f32 -1.442695, %v289_v32 }
 0x16a   :  { %571 = vpow2.f32 %v462_v33 }
 0x16b   :  { %573 = vpow2.f32 %v461_v34 }
 0x174   :  { %v572_v35 = vpop.eup %571 }
 0x175   :  { %v574_v36 = vpop.eup %573  ;;  %v304_v37 = vadd.f32 1.0, %v572_v35 }
 0x176   :  { %v303_v38 = vadd.f32 1.0, %v574_v36 }
 0x177   :  { %575 = vrcp.f32 %v304_v37 }
 0x178   :  { %577 = vrcp.f32 %v303_v38 }
 0x181   :  { %v576_v40 = vpop.eup %575 }
 0x182   :  { %v578_v41 = vpop.eup %577  ;;  %v310_v43 = vmul.f32 %v576_v40, %v294_v30 }
 0x183   :  { %v309_v45 = vmul.f32 %v578_v41, %v289_v32 }
 0x184   :  { %v312_v46 = vmul.f32 %v310_v43, %v208_v42 }
 0x185   :  { %v311_v47 = vmul.f32 %v309_v45, %v203_v44 }
 0x187   :  { %526 = vmatprep.mubr.msk.f32.mxu0 %vm321_vm1, %v311_v47 }
 0x188   :  { %527 = vmatmul.mubr.msk.f32.vlgmr.msra.gmra.mrb[0].mxu0 %vm321_vm1, %v312_v46 }
 0x25b   :  { %v528_v48 = vpop.f32.mrb[0].mxu0 }
 0x25c   :  { %408 = vst.msk [vmem:[#allocation2 + $0x8] sm:$0xff] %vm129_vm0, %v528_v48  ;;  %v394_v49 = vpop.f32.mrb[1].mxu0 }
 0x25d   :  { %407 = vst.msk [vmem:[#allocation2] sm:$0xff] %vm129_vm0, %v394_v49 }
 0x263   :  { %v423_v51 = vld [vmem:[#allocation2 + $0x8] sm:$0xff] }
 0x264   :  { %v422_v52 = vld [vmem:[#allocation2] sm:$0xff]  ;;  %v432_v53 = vadd.f32 %v465_v50, %v423_v51 }
 0x265   :  { %v431_v54 = vadd.f32 %v465_v50, %v422_v52 }
 0x266   :  { %434 = vst.msk [vmem:[#allocation15 + $0x8] sm:$0xff] %vm129_vm0, %v432_v53 }
 0x267   :  { %433 = vst.msk [vmem:[#allocation15] sm:$0xff] %vm129_vm0, %v431_v54 }
 0x268   :  { %744 = shalt.err (!%p741_p4)
}
 0x269   :  { %s745_s19 = scalar_lea.hbm %s955_s7, 256 }
 0x26a   :  { %p746_p5 = scmp.ne.s32.totalorder %s955_s7, %s745_s19  ;;  %p749_p6 = scmp.lt.u32.totalorder %s745_s19, %s955_s7 }
 0x26c   :  { %p751_p7 = pnand %p749_p6, %p746_p5 }
 0x26e   :  { %754 = shalt.err (!%p751_p7)
}
 0x26f   :  { %446 = dma.vmem_to_hbm [thread:$0]  %s441_s30, 256, %s955_s7, [#allocation5], %s767_s13, %s767_s13, %s768_s14  }
 0x270   :  { %763 = dma.done.wait [#allocation5], 256  }
 0x271   :  { %764 = vsyncadd [#allocation5], 4294967040 }
 0x272   :  { %450 = vsyncpa [#allocation4], 1 }
 0x273   :  { %451 = vsyncpa [#allocation7], 1 }
 0x274   :  { %452 = vsyncpa [#allocation10], 1 }
 0x275   :  { %453 = vsyncpa [#allocation13], 1 }
 0x276   :  { %454 = vsyncpa [#allocation5], 1 }

</bundles_post_ra>
